<compile_context>
chip_gen: v5e
topology: v5e:2x2
jax: 0.10.0
libtpu: 0.0.40
codegen_flags: <defaults>
</compile_context>

<pallas_src>
import numpy as np
import jax
import jax.numpy as jnp
from jax import lax
from jax.experimental import pallas as pl
from jax.experimental.pallas import tpu as pltpu

# ---- CartpoleDx / NominalModel constants (mirrors the PyTorch __init__) ----
GRAVITY, MASSCART, MASSPOLE, LENGTH = 9.8, 1.0, 0.1, 0.5   # p = (9.8, 1.0, 0.1, 0.5)
FORCE_MAG = 20.0                                           # f = 20.0
DT = 0.05                                                  # CartpoleDx.dt
GOAL_STATE   = np.array([0.0, 0.0, 1.0, 0.0, 0.0], np.float32)
GOAL_WEIGHTS = np.array([0.1, 0.1, 1.0, 1.0, 0.1], np.float32)
CTRL_PENALTY = 0.001
MPC_T = 25

# Derived constants folded at trace time (VPU immediates inside the kernel).
TOTAL_MASS     = MASSPOLE + MASSCART
INV_TOTAL_MASS = 1.0 / TOTAL_MASS
PML            = MASSPOLE * LENGTH              # polemass_length
PML_OVER_TOTAL = PML * INV_TOTAL_MASS
DENOM_A        = 4.0 * LENGTH / 3.0             # LENGTH * 4/3
DENOM_B        = PML_OVER_TOTAL                 # LENGTH * MASSPOLE / TOTAL_MASS
INV_DT         = 1.0 / DT

# Dispatch thresholds (lanes = padded batch elements).
PALLAS_MIN_BATCH       = 512       # below this: pure jnp (single fused VPU fusion)
SINGLE_BLOCK_MAX_LANES = 65536     # one full-array VMEM block up to 64K lanes (~2.9 MiB)
GRID_S_TILE            = 1024      # 131072 lanes / grid step (~11.5 MiB double-buffered)


def _true_obj_cost(n_batch):
    """Mirrors CartpoleDx.get_true_obj() + the Q/p tiling done in __init__.

    Only consumed by the (untranslated) MPC solver; built here for shape
    fidelity with the original module.
    """
    gw = jnp.asarray(GOAL_WEIGHTS)
    q = jnp.concatenate([gw, CTRL_PENALTY * jnp.ones((1,), jnp.float32)])
    px = -jnp.sqrt(gw) * jnp.asarray(GOAL_STATE)
    p = jnp.concatenate([px, jnp.zeros((1,), jnp.float32)])
    Q = jnp.tile(jnp.diag(q)[None, None], (MPC_T, n_batch, 1, 1))   # (T, B, 6, 6)
    p = jnp.tile(p[None], (MPC_T, n_batch, 1))                      # (T, B, 6)
    return Q, p


def _cartpole_residual_kernel(y_ref, u_ref, out_ref):
    """out = (CartpoleDx(y, u) - y) / dt on (5, S, 128) lane-major slabs.

    y_ref:   (5, S, 128) VMEM f32 -- components x, dx, cos(th), sin(th), dth
    u_ref:   (S, 128)    VMEM f32
    out_ref: (5, S, 128) VMEM f32
    Each component view is a full (8,128)-dense (S, 128) slab, so every
    VPU/EUP op runs at full sublane utilization and every store is an
    unmasked full-tile vst.  All physical constants are immediates.
    """
    dx     = y_ref[1]                     # (S, 128)
    cos_th = y_ref[2]
    sin_th = y_ref[3]
    dth    = y_ref[4]

    u = jnp.clip(u_ref[...], -FORCE_MAG, FORCE_MAG)              # (S, 128)

    cart_in = (u + PML * dth * dth * sin_th) * INV_TOTAL_MASS
    # denominator folded: LENGTH*(4/3 - m_p*cos^2/m_tot) == A - B*cos^2
    th_acc = (GRAVITY * sin_th - cos_th * cart_in) / (
        DENOM_A - DENOM_B * cos_th * cos_th)
    xacc = cart_in - PML_OVER_TOTAL * th_acc * cos_th

    # torch path: th = atan2(sin_th, cos_th); new (cos, sin) = cos/sin(th + dt*dth).
    # Mathematically identical angle-addition form (including the implicit
    # renormalization of (cos_th, sin_th) that atan2 -> cos/sin performs),
    # avoiding atan2 inside Mosaic.  lax.rsqrt goes to the otherwise-idle EUP
    # slot; the epsilon guard keeps a degenerate cos=sin=0 state (and
    # zero-padded lanes) finite -- it differs from torch only at exactly
    # (cos,sin)=(0,0), which only occurs on padding lanes that get sliced off.
    delta = DT * dth
    cd = jnp.cos(delta)
    sd = jnp.sin(delta)
    r2 = cos_th * cos_th + sin_th * sin_th
    inv_r = lax.rsqrt(jnp.maximum(r2, jnp.float32(1e-30)))
    cos_new = (cos_th * cd - sin_th * sd) * inv_r
    sin_new = (sin_th * cd + cos_th * sd) * inv_r

    # Residual rows.  (x + dt*dx - x)/dt == dx, (dx + dt*xacc - dx)/dt == xacc,
    # (dth + dt*th_acc - dth)/dt == th_acc; only cos/sin need the difference
    # form, written as a multiply by the precomputed inv_dt.
    out_ref[0] = dx
    out_ref[1] = xacc
    out_ref[2] = (cos_new - cos_th) * INV_DT
    out_ref[3] = (sin_new - sin_th) * INV_DT
    out_ref[4] = th_acc


def _round_up(n, m):
    return ((n + m - 1) // m) * m


def nominal_model_residual_packed(y_t, u_t):
    """Residual on the resident lane-major layout (no wrapper glue).

    y_t: (5, S, 128) f32, u_t: (S, 128) f32, S a multiple of 8.
    Returns (5, S, 128) f32.  Callers that keep the state in this layout
    across integrator steps avoid all HBM pad/transpose round trips.
    """
    S = y_t.shape[1]
    lanes = S * 128
    if lanes <= SINGLE_BLOCK_MAX_LANES:
        # One full-array VMEM block: no grid, no pipelining machinery.
        return pl.pallas_call(
            _cartpole_residual_kernel,
            out_shape=jax.ShapeDtypeStruct((5, S, 128), jnp.float32),
            in_specs=[
                pl.BlockSpec(memory_space=pltpu.MemorySpace.VMEM),
                pl.BlockSpec(memory_space=pltpu.MemorySpace.VMEM),
            ],
            out_specs=pl.BlockSpec(memory_space=pltpu.MemorySpace.VMEM),
        )(y_t, u_t)

    # Huge batch: 1-D grid over the S axis, 131072 lanes (~5.8 MiB of
    # y+u+out, ~11.5 MiB double-buffered) per step so the DMA pipeline is
    # HBM-bound rather than per-step-overhead-bound.
    if S % GRID_S_TILE != 0:
        raise ValueError(f"S={S} must be a multiple of {GRID_S_TILE} for the grid path")
    # TODO(synk): on v7x (2 TensorCores/chip) switch dimension_semantics to
    # (pltpu.CORE_PARALLEL,) to actually split the grid across cores; plain
    # "parallel" is kept here because CORE_PARALLEL is v7x-specific.
    return pl.pallas_call(
        _cartpole_residual_kernel,
        out_shape=jax.ShapeDtypeStruct((5, S, 128), jnp.float32),
        grid=(S // GRID_S_TILE,),
        in_specs=[
            pl.BlockSpec((5, GRID_S_TILE, 128), lambda i: (0, i, 0)),
            pl.BlockSpec((GRID_S_TILE, 128), lambda i: (i, 0)),
        ],
        out_specs=pl.BlockSpec((5, GRID_S_TILE, 128), lambda i: (0, i, 0)),
        compiler_params=pltpu.CompilerParams(
            dimension_semantics=("parallel",),
            vmem_limit_bytes=32 * 1024 * 1024,   # below v5e/v6e/v7x limits
        ),
    )(y_t, u_t)


def _residual_jnp(y, u):
    """Pure-JAX residual (exact torch math, atan2 form).

    Used both as the tiny-batch fast path (XLA fuses it into one VPU fusion,
    cheaper than a pallas_call + pad/transpose round trip) and as the
    correctness reference.
    """
    x, dx, c, s, dth = (y[:, i] for i in range(5))
    uu = jnp.clip(u[:, 0], -FORCE_MAG, FORCE_MAG)
    cart_in = (uu + PML * dth ** 2 * s) * INV_TOTAL_MASS
    th_acc = (GRAVITY * s - c * cart_in) / (DENOM_A - DENOM_B * c ** 2)
    xacc = cart_in - PML_OVER_TOTAL * th_acc * c
    th = jnp.arctan2(s, c)
    x_n, dx_n = x + DT * dx, dx + DT * xacc
    th_n, dth_n = th + DT * dth, dth + DT * th_acc
    st = jnp.stack([x_n, dx_n, jnp.cos(th_n), jnp.sin(th_n), dth_n], axis=1)
    return (st - y) * INV_DT


def nominal_model_forward(t, y, u, *, force_pallas=False):
    """JAX/Pallas version of NominalModel.forward.

    `u` plays the role of `nominal_actions[0]` from the mpc.MPC call.
    # TODO(synk): mpc.MPC (box-constrained differentiable iLQR: 50 lqr_iter,
    # PNQP projection, linesearch) has no clean Pallas equivalent; the first
    # nominal action is therefore an explicit input instead of being solved for.
    """
    del t  # unused by the dynamics, kept for signature parity with forward(t, y)
    y = jnp.asarray(y, jnp.float32)
    state = y[None, :] if y.ndim == 1 else y            # (B, 5)
    u = jnp.atleast_1d(jnp.asarray(u, jnp.float32))
    u = u[:, None] if u.ndim == 1 else u                # (B, 1)
    B = state.shape[0]

    if not force_pallas and B < PALLAS_MIN_BATCH:
        # Tiny batch: one fused jnp expression beats kernel-launch + glue.
        return _residual_jnp(state, u)

    # Pack into lane-major (5, S, 128) slabs.  Pad the batch to a multiple of
    # 1024 lanes (S multiple of 8 => full sublane density); the grid path
    # additionally pads to a multiple of the 131072-lane tile.
    Bp = _round_up(max(B, 1), 1024)
    if Bp > SINGLE_BLOCK_MAX_LANES:
        Bp = _round_up(Bp, GRID_S_TILE * 128)
    S = Bp // 128
    pad = Bp - B
    # jnp.pad on the pre-transposed arrays lets XLA fuse transpose+pad into a
    # single copy (no zeros materialization / dynamic-update-slice).
    y_t = jnp.pad(state.T, ((0, 0), (0, pad))).reshape(5, S, 128)
    u_t = jnp.pad(u.reshape(B), ((0, pad),)).reshape(S, 128)

    out_t = nominal_model_residual_packed(y_t, u_t)
    return out_t.reshape(5, Bp)[:, :B].T                # back to (B, 5)


if __name__ == "__main__":
    key = jax.random.PRNGKey(0)
    k_y, k_u = jax.random.split(key)

    n_batch = 59          # module default n_batch
    theta_0 = np.pi
    theta_dot_0 = -np.pi / 2
    nominal_y0 = jnp.array(
        [0.0, 0.0, np.cos(theta_0), np.sin(theta_0), theta_dot_0],
        dtype=jnp.float32)

    # batch of states: nominal_y0 plus a small deterministic perturbation
    y = nominal_y0[None, :] + 0.1 * jax.random.normal(
        k_y, (n_batch, 5), dtype=jnp.float32)

    # stand-in for nominal_actions[0], drawn inside the control box [-1, 1]
    u = jax.random.uniform(
        k_u, (n_batch, 1), dtype=jnp.float32, minval=-1.0, maxval=1.0)

    # cost tensors built in __init__ (consumed only by the untranslated MPC)
    Q_cost, p_cost = _true_obj_cost(n_batch)   # (25, B, 6, 6), (25, B, 6)

    t = jnp.float32(0.0)
    ref = _residual_jnp(y, u)

    # Exercise the Pallas kernel (single-block path, padded to 1024 lanes).
    out_pallas = jax.block_until_ready(
        nominal_model_forward(t, y, u, force_pallas=True))
    np.testing.assert_allclose(np.asarray(out_pallas), np.asarray(ref),
                               rtol=1e-4, atol=1e-4)

    # Exercise the auto dispatcher (tiny-batch fused-jnp fast path).
    out_auto = jax.block_until_ready(nominal_model_forward(t, y, u))
    np.testing.assert_allclose(np.asarray(out_auto), np.asarray(ref),
                               rtol=1e-4, atol=1e-4)

    print("KERNEL_OK")
</pallas_src>

<mosaic_0001>
module attributes {stable_mosaic.version = 11 : i64} {
  func.func @_cartpole_residual_kernel(%arg0: memref<5x8x128xf32, #tpu.memory_space<vmem>>, %arg1: memref<8x128xf32, #tpu.memory_space<vmem>>, %arg2: memref<5x8x128xf32, #tpu.memory_space<vmem>>) attributes {dimension_semantics = [], scalar_prefetch = 0 : i64, scratch_operands = 0 : i64, tpu.core_type = #tpu.core_type<tc>} {
    %c1 = arith.constant 1 : index
    %c0 = arith.constant 0 : index
    %c0_0 = arith.constant 0 : index
    %0 = vector.load %arg0[%c1, %c0, %c0_0] : memref<5x8x128xf32, #tpu.memory_space<vmem>>, vector<1x8x128xf32>
    %1 = vector.shape_cast %0 : vector<1x8x128xf32> to vector<8x128xf32>
    %c2 = arith.constant 2 : index
    %c0_1 = arith.constant 0 : index
    %c0_2 = arith.constant 0 : index
    %2 = vector.load %arg0[%c2, %c0_1, %c0_2] : memref<5x8x128xf32, #tpu.memory_space<vmem>>, vector<1x8x128xf32>
    %3 = vector.shape_cast %2 : vector<1x8x128xf32> to vector<8x128xf32>
    %c3 = arith.constant 3 : index
    %c0_3 = arith.constant 0 : index
    %c0_4 = arith.constant 0 : index
    %4 = vector.load %arg0[%c3, %c0_3, %c0_4] : memref<5x8x128xf32, #tpu.memory_space<vmem>>, vector<1x8x128xf32>
    %5 = vector.shape_cast %4 : vector<1x8x128xf32> to vector<8x128xf32>
    %c4 = arith.constant 4 : index
    %c0_5 = arith.constant 0 : index
    %c0_6 = arith.constant 0 : index
    %6 = vector.load %arg0[%c4, %c0_5, %c0_6] : memref<5x8x128xf32, #tpu.memory_space<vmem>>, vector<1x8x128xf32>
    %7 = vector.shape_cast %6 : vector<1x8x128xf32> to vector<8x128xf32>
    %c0_7 = arith.constant 0 : index
    %c0_8 = arith.constant 0 : index
    %8 = vector.load %arg1[%c0_7, %c0_8] : memref<8x128xf32, #tpu.memory_space<vmem>>, vector<8x128xf32>
    %cst = arith.constant -2.000000e+01 : f32
    %cst_9 = arith.constant 2.000000e+01 : f32
    %9 = vector.broadcast %cst : f32 to vector<8x128xf32>
    %10 = arith.maximumf %9, %8 : vector<8x128xf32>
    %11 = vector.broadcast %cst_9 : f32 to vector<8x128xf32>
    %12 = arith.minimumf %11, %10 : vector<8x128xf32>
    %cst_10 = arith.constant 5.000000e-02 : f32
    %13 = vector.broadcast %cst_10 : f32 to vector<8x128xf32>
    %14 = arith.mulf %13, %7 : vector<8x128xf32>
    %15 = arith.mulf %14, %7 : vector<8x128xf32>
    %16 = arith.mulf %15, %5 : vector<8x128xf32>
    %17 = arith.addf %12, %16 : vector<8x128xf32>
    %cst_11 = arith.constant 0.909090936 : f32
    %18 = vector.broadcast %cst_11 : f32 to vector<8x128xf32>
    %19 = arith.mulf %17, %18 : vector<8x128xf32>
    %cst_12 = arith.constant 9.800000e+00 : f32
    %20 = vector.broadcast %cst_12 : f32 to vector<8x128xf32>
    %21 = arith.mulf %20, %5 : vector<8x128xf32>
    %22 = arith.mulf %3, %19 : vector<8x128xf32>
    %23 = arith.subf %21, %22 : vector<8x128xf32>
    %cst_13 = arith.constant 0.0454545468 : f32
    %24 = vector.broadcast %cst_13 : f32 to vector<8x128xf32>
    %25 = arith.mulf %24, %3 : vector<8x128xf32>
    %26 = arith.mulf %25, %3 : vector<8x128xf32>
    %cst_14 = arith.constant 0.666666686 : f32
    %27 = vector.broadcast %cst_14 : f32 to vector<8x128xf32>
    %28 = arith.subf %27, %26 : vector<8x128xf32>
    %29 = arith.divf %23, %28 : vector<8x128xf32>
    %cst_15 = arith.constant 0.0454545468 : f32
    %30 = vector.broadcast %cst_15 : f32 to vector<8x128xf32>
    %31 = arith.mulf %30, %29 : vector<8x128xf32>
    %32 = arith.mulf %31, %3 : vector<8x128xf32>
    %33 = arith.subf %19, %32 : vector<8x128xf32>
    %cst_16 = arith.constant 5.000000e-02 : f32
    %34 = vector.broadcast %cst_16 : f32 to vector<8x128xf32>
    %35 = arith.mulf %34, %7 : vector<8x128xf32>
    %36 = math.cos %35 : vector<8x128xf32>
    %37 = math.sin %35 : vector<8x128xf32>
    %38 = arith.mulf %3, %3 : vector<8x128xf32>
    %39 = arith.mulf %5, %5 : vector<8x128xf32>
    %40 = arith.addf %38, %39 : vector<8x128xf32>
    %cst_17 = arith.constant 1.000000e-30 : f32
    %41 = vector.broadcast %cst_17 : f32 to vector<8x128xf32>
    %42 = arith.maximumf %40, %41 : vector<8x128xf32>
    %43 = math.rsqrt %42 : vector<8x128xf32>
    %44 = arith.mulf %3, %36 : vector<8x128xf32>
    %45 = arith.mulf %5, %37 : vector<8x128xf32>
    %46 = arith.subf %44, %45 : vector<8x128xf32>
    %47 = arith.mulf %46, %43 : vector<8x128xf32>
    %48 = arith.mulf %5, %36 : vector<8x128xf32>
    %49 = arith.mulf %3, %37 : vector<8x128xf32>
    %50 = arith.addf %48, %49 : vector<8x128xf32>
    %51 = arith.mulf %50, %43 : vector<8x128xf32>
    %c0_18 = arith.constant 0 : index
    %c0_19 = arith.constant 0 : index
    %c0_20 = arith.constant 0 : index
    %52 = vector.load %arg2[%c0_18, %c0_19, %c0_20] : memref<5x8x128xf32, #tpu.memory_space<vmem>>, vector<1x8x128xf32>
    %53 = vector.shape_cast %52 : vector<1x8x128xf32> to vector<8x128xf32>
    %54 = vector.shape_cast %1 : vector<8x128xf32> to vector<1x8x128xf32>
    tpu.vector_store %arg2[%c0_18, %c0_19, %c0_20], %54 {strides = array<i32>} : memref<5x8x128xf32, #tpu.memory_space<vmem>>, vector<1x8x128xf32>,
    %c1_21 = arith.constant 1 : index
    %c0_22 = arith.constant 0 : index
    %c0_23 = arith.constant 0 : index
    %55 = vector.load %arg2[%c1_21, %c0_22, %c0_23] : memref<5x8x128xf32, #tpu.memory_space<vmem>>, vector<1x8x128xf32>
    %56 = vector.shape_cast %55 : vector<1x8x128xf32> to vector<8x128xf32>
    %57 = vector.shape_cast %33 : vector<8x128xf32> to vector<1x8x128xf32>
    tpu.vector_store %arg2[%c1_21, %c0_22, %c0_23], %57 {strides = array<i32>} : memref<5x8x128xf32, #tpu.memory_space<vmem>>, vector<1x8x128xf32>,
    %58 = arith.subf %47, %3 : vector<8x128xf32>
    %cst_24 = arith.constant 2.000000e+01 : f32
    %59 = vector.broadcast %cst_24 : f32 to vector<8x128xf32>
    %60 = arith.mulf %58, %59 : vector<8x128xf32>
    %c2_25 = arith.constant 2 : index
    %c0_26 = arith.constant 0 : index
    %c0_27 = arith.constant 0 : index
    %61 = vector.load %arg2[%c2_25, %c0_26, %c0_27] : memref<5x8x128xf32, #tpu.memory_space<vmem>>, vector<1x8x128xf32>
    %62 = vector.shape_cast %61 : vector<1x8x128xf32> to vector<8x128xf32>
    %63 = vector.shape_cast %60 : vector<8x128xf32> to vector<1x8x128xf32>
    tpu.vector_store %arg2[%c2_25, %c0_26, %c0_27], %63 {strides = array<i32>} : memref<5x8x128xf32, #tpu.memory_space<vmem>>, vector<1x8x128xf32>,
    %64 = arith.subf %51, %5 : vector<8x128xf32>
    %cst_28 = arith.constant 2.000000e+01 : f32
    %65 = vector.broadcast %cst_28 : f32 to vector<8x128xf32>
    %66 = arith.mulf %64, %65 : vector<8x128xf32>
    %c3_29 = arith.constant 3 : index
    %c0_30 = arith.constant 0 : index
    %c0_31 = arith.constant 0 : index
    %67 = vector.load %arg2[%c3_29, %c0_30, %c0_31] : memref<5x8x128xf32, #tpu.memory_space<vmem>>, vector<1x8x128xf32>
    %68 = vector.shape_cast %67 : vector<1x8x128xf32> to vector<8x128xf32>
    %69 = vector.shape_cast %66 : vector<8x128xf32> to vector<1x8x128xf32>
    tpu.vector_store %arg2[%c3_29, %c0_30, %c0_31], %69 {strides = array<i32>} : memref<5x8x128xf32, #tpu.memory_space<vmem>>, vector<1x8x128xf32>,
    %c4_32 = arith.constant 4 : index
    %c0_33 = arith.constant 0 : index
    %c0_34 = arith.constant 0 : index
    %70 = vector.load %arg2[%c4_32, %c0_33, %c0_34] : memref<5x8x128xf32, #tpu.memory_space<vmem>>, vector<1x8x128xf32>
    %71 = vector.shape_cast %70 : vector<1x8x128xf32> to vector<8x128xf32>
    %72 = vector.shape_cast %29 : vector<8x128xf32> to vector<1x8x128xf32>
    tpu.vector_store %arg2[%c4_32, %c0_33, %c0_34], %72 {strides = array<i32>} : memref<5x8x128xf32, #tpu.memory_space<vmem>>, vector<1x8x128xf32>,
    return
  }
}

</mosaic_0001>

<bundles_post_ra>
// kernel: tpu_custom_call.1
= control target key start
LH: loop header
LB: loop body
LE: loop exit
PB: predicated region body
PF: predicated region fallthrough
CT: control target
= control target key end

     0   :  { %7 = vsyncpa [#allocation3], 0  ;;  %s674_s0 = inlined_call_operand.hbm [shape: f32[5,8,128], index: 0, kind: input, shape index: {}]   ;;  %s675_s1 = inlined_call_operand.hbm [shape: f32[8,128], index: 1, kind: input, shape index: {}]   ;;  %s676_s2 = inlined_call_operand.hbm [shape: f32[5,8,128], index: 2, kind: output, shape index: {}]  }
   0x1   :  { %8 = vsyncpa [#allocation6], 0 }
   0x2   :  { %9 = vsyncpa [#allocation4], 0  ;;  %s14_s11 = sshll.u32 %s674_s0, 4  ;;  %s547_s12 = smov [#allocation2]   ;;  %s15_s11 = int_to_ptr.hbm [resolvable:$true] %s14_s11 }
   0x3   :  { %s16_s13 = sshll.u32 %s547_s12, 4  ;;  %s28_s16 = sshll.u32 %s675_s1, 4  ;;  %s17_s13 = int_to_ptr.vmem [resolvable:$true] %s16_s13  ;;  %s29_s16 = int_to_ptr.hbm [resolvable:$true] %s28_s16 }
   0x4   :  { %s548_s17 = smov 128   ;;  %s549_s18 = smov 8  }
   0x5   :  { %22 = dma.hbm_to_vmem [thread:$0]  %s15_s11, 640, %s17_s13, [#allocation3], %s548_s17, %s548_s17, %s549_s18  }
   0x6   :  { %s550_s19 = smov [#allocation5]  }
   0x7   :  { %s30_s20 = sshll.u32 %s550_s19, 4  ;;  %s31_s20 = int_to_ptr.vmem [resolvable:$true] %s30_s20 }
   0x8   :  { %33 = dma.hbm_to_vmem [thread:$0]  %s29_s16, 128, %s31_s20, [#allocation6]  }
   0x9   :  { %541 = dma.done.wait [#allocation3], 640  }
   0xa   :  { %542 = vsyncadd [#allocation3], 4294966656 }
   0xb   :  { %543 = dma.done.wait [#allocation6], 128  }
   0xc   :  { %544 = vsyncadd [#allocation6], 4294967168  ;;  %v43_v0 = vld [vmem:[#allocation2 + $0x8] sm:$0xff]  ;;  %v583_v1 = vld [vmem:[#allocation2 + $0x10] sm:$0xff]  ;;  %v551_v34 = vmov 683565275  }
   0xd   :  { %413 = vst [vmem:[#allocation7] sm:$0xff] %v43_v0  ;;  %v49_v2 = vld [vmem:[#allocation2 + $0x20] sm:$0xff]  ;;  %v50_v3 = vld [vmem:[#allocation5] sm:$0xff]  ;;  %v61_v5 = vmul.f32 0.045454547, %v583_v1  ;;  %v591_v10 = vld [vmem:[#allocation2 + $0x18] sm:$0xff] }
   0xe   :  { %v585_v4 = vmul.f32 0.05, %v49_v2  ;;  %v446_v6 = vclamps-f32 %v50_v3, 20.0  ;;  %v58_v23 = vmul.f32 9.8, %v591_v10  ;;  %s558_s0 = smov [#allocation7]  }
   0xf   :  { %v62_v8 = vmul.f32 %v61_v5, %v583_v1  ;;  %v552_v36 = vmov 2475754826   ;;  %v553_v38 = vmov 2131351028   ;;  %v554_v40 = vmov 2102212464  }
  0x10   :  { %v54_v7 = vmul.f32 %v585_v4, %v49_v2  ;;  %v85_v9 = vand.u32 2139095040, %v585_v4  ;;  %v82_v14 = vand.u32 2147483647, %v585_v4  ;;  %v555_v42 = vmov 920167782   ;;  %s430_s1 = sshll.u32 %s558_s0, 4  ;;  %s431_s1 = int_to_ptr.vmem [resolvable:$true] %s430_s1 }
  0x11   :  { %v63_v12 = vsub.f32 0.6666667, %v62_v8  ;;  %v556_v52 = vmov 1326507024   ;;  %s432_s23 = sshll.u32 %s676_s2, 4  ;;  %s433_s23 = int_to_ptr.hbm [resolvable:$true] %s432_s23 }
  0x12   :  { %v55_v11 = vmul.f32 %v54_v7, %v591_v10  ;;  %v86_v13 = vshrl.u32 %v85_v9, 23  ;;  %v89_v17 = vand.u32 8388607, %v82_v14 }
  0x13   :  { %465 = vrcp.f32 %v63_v12  ;;  %v73_v20 = vand.u32 2147483647, %v63_v12  ;;  %v75_v21 = vand.u32 2147483648, %v63_v12  ;;  %vm69_vm1 = vweird.f32 %v63_v12 }
  0x14   :  { %v56_v15 = vadd.f32 %v446_v6, %v55_v11  ;;  %v447_v16 = vadd.s32 4294967169, %v86_v13  ;;  %v90_v25 = vor.u32 8388608, %v89_v17 }
  0x15   :  { %vm602_vm3 = vcmp.eq.f32.partialorder %v73_v20, 8.507059e+37  ;;  %v76_v30 = vor.u32 1.1754944e-38, %v75_v21 }
  0x16   :  { %v597_v18 = vmul.f32 0.90909094, %v56_v15  ;;  %v92_v19 = vadd.s32 1, %v447_v16  ;;  %v608_v44 = vshll.u32 %v90_v25, 8 }
  0x18   :  { %vm93_vm0 = vcmp.gt.s32.totalorder %v92_v19, 0  ;;  %v59_v26 = vmul.f32 %v597_v18, %v583_v1  ;;  %v131_v2 = vand.u32 65535, %v608_v44  ;;  %v132_v7 = vshrl.u32 %v608_v44, 16 }
  0x19   :  { %v466_v22 = vpop.eup %465  ;;  %v94_v24 = vsel %vm93_vm0, %v92_v19, 0  ;;  %vm84_vm0 = vcmp.lt.s32.totalorder %v585_v4, 0 }
  0x1a   :  { %v65_v27 = vmul.f32 %v466_v22, %v63_v12  ;;  %v96_v28 = vand.u32 31, %v94_v24  ;;  %vm70_vm2 = vweird.f32 %v466_v22  ;;  %v606_v31 = vshrl.u32 %v94_v24, 5 }
  0x1b   :  { %v60_v45 = vsub.f32 %v58_v23, %v59_v26  ;;  %vm612_vm4 = vmor %vm69_vm1, %vm70_vm2  ;;  %vm83_vm1 = vcmp.le.f32.partialorder %v82_v14, 0.7853982 }
  0x1c   :  { %v66_v32 = vsub.f32 1.0, %v65_v27  ;;  %v97_v33 = vsub.s32 32, %v96_v28  ;;  %v99_v35 = vshll.u32 %v551_v34, %v96_v28  ;;  %v102_v37 = vshll.u32 %v552_v36, %v96_v28 }
  0x1d   :  { %v105_v39 = vshll.u32 %v553_v38, %v96_v28  ;;  %v108_v41 = vshll.u32 %v554_v40, %v96_v28  ;;  %v111_v43 = vshll.u32 %v555_v42, %v96_v28  ;;  %vm114_vm5 = vcmp.lt.s32.totalorder %v606_v31, 1 }
  0x1e   :  { %v67_v46 = vmul.f32 %v466_v22, %v66_v32  ;;  %v100_v47 = vshrl.u32 %v552_v36, %v97_v33  ;;  %v103_v48 = vshrl.u32 %v553_v38, %v97_v33  ;;  %v106_v50 = vshrl.u32 %v554_v40, %v97_v33 }
  0x1f   :  { %v109_v51 = vshrl.u32 %v555_v42, %v97_v33  ;;  %v112_v53 = vshrl.u32 %v556_v52, %v97_v33  ;;  %vm116_vm6 = vcmp.lt.s32.totalorder %v606_v31, 3  ;;  %vm117_vm7 = vcmp.lt.s32.totalorder %v606_v31, 4 }
  0x20   :  { %v68_v54 = vadd.f32 %v466_v22, %v67_v46  ;;  %v101_v55 = vor.u32 %v100_v47, %v99_v35  ;;  %v104_v56 = vor.u32 %v103_v48, %v102_v37  ;;  %v107_v57 = vor.u32 %v106_v50, %v105_v39 }
  0x21   :  { %v110_v58 = vor.u32 %v109_v51, %v108_v41  ;;  %v113_v59 = vor.u32 %v112_v53, %v111_v43  ;;  %vm115_vm8 = vcmp.lt.s32.totalorder %v606_v31, 2  ;;  %v98_v16 = vshrl.u32 %v551_v34, %v97_v33 }
  0x22   :  { %v72_v60 = vsel %vm612_vm4, %v466_v22, %v68_v54  ;;  %v122_v61 = vsel %vm114_vm5, %v101_v55, %v104_v56  ;;  %v126_v0 = vsel %vm114_vm5, %v104_v56, %v107_v57  ;;  %v119_v28 = vsel %vm117_vm7, %v107_v57, 2102212464 }
  0x23   :  { %v77_v62 = vsel %vm602_vm3, %v76_v30, %v72_v60  ;;  %v123_v63 = vsel %vm117_vm7, %v110_v58, 920167782  ;;  %v127_v6 = vsel %vm117_vm7, %v113_v59, 1326507024  ;;  %v118_v34 = vsel %vm114_vm5, %v98_v16, %v101_v55 }
  0x24   :  { %v78_v3 = vmul.f32 %v77_v62, %v60_v45  ;;  %v124_v5 = vsel %vm116_vm6, %v107_v57, %v123_v63  ;;  %v128_v9 = vsel %vm116_vm6, %v110_v58, %v127_v6  ;;  %v120_v38 = vsel %vm116_vm6, %v104_v56, %v119_v28 }
  0x25   :  { %v125_v8 = vsel %vm115_vm8, %v122_v61, %v124_v5  ;;  %v129_v12 = vsel %vm115_vm8, %v126_v0, %v128_v9  ;;  %v557_v39 = vmov 0   ;;  %v121_v53 = vsel %vm115_vm8, %v118_v34, %v120_v38 }
  0x26   :  { %v79_v11 = vmul.f32 0.045454547, %v78_v3  ;;  %425 = vst [vmem:[#allocation7 + $0x20] sm:$0xff] %v78_v3  ;;  %v155_v13 = vand.u32 65535, %v125_v8  ;;  %v156_v15 = vshrl.u32 %v125_v8, 16  ;;  %v133_v17 = vand.u32 65535, %v129_v12 }
  0x27   :  { %v134_v19 = vshrl.u32 %v129_v12, 16  ;;  %v175_v59 = vmul.u32 %v608_v44, %v121_v53  ;;  %v391_v8 = vmul.f32 %v583_v1, %v583_v1  ;;  %v392_v9 = vmul.f32 %v591_v10, %v591_v10 }
  0x28   :  { %v80_v20 = vmul.f32 %v79_v11, %v583_v1  ;;  %v157_v21 = vmul.u32 %v155_v13, %v131_v2  ;;  %v158_v22 = vmul.u32 %v156_v15, %v131_v2  ;;  %v159_v23 = vmul.u32 %v155_v13, %v132_v7 }
  0x29   :  { %v135_v24 = vmul.u32 %v133_v17, %v131_v2  ;;  %v136_v25 = vmul.u32 %v134_v19, %v131_v2  ;;  %v137_v26 = vmul.u32 %v133_v17, %v132_v7  ;;  %v160_v29 = vmul.u32 %v156_v15, %v132_v7 }
  0x2a   :  { %v81_v27 = vsub.f32 %v597_v18, %v80_v20  ;;  %v161_v30 = vshll.u32 %v158_v22, 16  ;;  %v138_v32 = vmul.u32 %v134_v19, %v132_v7  ;;  %v163_v36 = vshll.u32 %v159_v23, 16 }
  0x2b   :  { %v139_v35 = vshll.u32 %v136_v25, 16  ;;  %v141_v33 = vshll.u32 %v137_v26, 16  ;;  %v162_v42 = vshrl.u32 %v158_v22, 16  ;;  %v140_v45 = vshrl.u32 %v136_v25, 16 }
  0x2c   :  { %415 = vst [vmem:[#allocation7 + $0x8] sm:$0xff] %v81_v27  ;;  %vm165_vm9 = vc.u32 %v157_v21, %v161_v30  ;;  %v167_v37 = vadd.s32 %v161_v30, %v157_v21  ;;  %v164_v49 = vshrl.u32 %v159_v23, 16  ;;  %v142_v51 = vshrl.u32 %v137_v26, 16 }
  0x2d   :  { %vm143_vm10 = vc.u32 %v135_v24, %v139_v35  ;;  %v145_v18 = vadd.s32 %v139_v35, %v135_v24  ;;  %v166_v40 = vsel %vm165_vm9, 1, %v557_v39  ;;  %v393_v16 = vadd.f32 %v392_v9, %v391_v8 }
  0x2e   :  { %v144_v41 = vsel %vm143_vm10, 1, %v557_v39  ;;  %v168_v43 = vadd.s32 %v166_v40, %v160_v29  ;;  %vm169_vm11 = vc.u32 %v167_v37, %v163_v36  ;;  %v171_v56 = vadd.s32 %v167_v37, %v163_v36 }
  0x2f   :  { %v146_v46 = vadd.s32 %v144_v41, %v138_v32  ;;  %vm147_vm12 = vc.u32 %v145_v18, %v141_v33  ;;  %v170_v47 = vsel %vm169_vm11, 1, %v557_v39  ;;  %v394_v22 = vmax.f32 %v393_v16, 1e-30 }
  0x30   :  { %v148_v48 = vsel %vm147_vm12, 1, %v557_v39  ;;  %v172_v50 = vadd.s32 %v170_v47, %v168_v43  ;;  %vm225_vm10 = vweird.f32 %v585_v4 }
  0x31   :  { %v150_v52 = vadd.s32 %v148_v48, %v146_v46  ;;  %467 = vrsqrt.f32 %v394_v22  ;;  %vm401_vm8 = vweird.f32 %v394_v22 }
  0x32   :  { %v173_v54 = vadd.s32 %v172_v50, %v162_v42 }
  0x33   :  { %v151_v55 = vadd.s32 %v150_v52, %v140_v45 }
  0x34   :  { %v174_v57 = vadd.s32 %v173_v54, %v164_v49 }
  0x35   :  { %v152_v58 = vadd.s32 %v151_v55, %v142_v51 }
  0x36   :  { %v178_v60 = vadd.s32 1, %v174_v57 }
  0x37   :  { %vm177_vm13 = vc.u32 %v152_v58, %v171_v56  ;;  %v176_v44 = vadd.s32 %v171_v56, %v152_v58  ;;  %v468_v30 = vpop.eup %467 }
  0x38   :  { %v179_v61 = vsel %vm177_vm13, %v178_v60, %v174_v57  ;;  %v396_v38 = vmul.f32 %v468_v30, %v394_v22  ;;  %vm402_vm9 = vweird.f32 %v468_v30 }
  0x39   :  { %v180_v62 = vadd.s32 %v179_v61, %v175_v59  ;;  %vm403_vm11 = vmor %vm401_vm8, %vm402_vm9 }
  0x3a   :  { %v397_v43 = vmul.f32 %v468_v30, %v396_v38 }
  0x3b   :  { %v181_v63 = vadd.s32 536870912, %v180_v62 }
  0x3c   :  { %v398_v50 = vmul.f32 0.5, %v397_v43 }
  0x3d   :  { %v182_v0 = vshrl.u32 %v181_v63, 30 }
  0x3e   :  { %v399_v55 = vsub.f32 1.5, %v398_v50 }
  0x3f   :  { %v183_v2 = vshll.u32 %v182_v0, 30  ;;  %v206_v27 = vsub.s32 4, %v182_v0 }
  0x40   :  { %v400_v61 = vmul.f32 %v468_v30, %v399_v55 }
  0x41   :  { %v184_v3 = vsub.s32 %v180_v62, %v183_v2  ;;  %v207_v32 = vsel %vm84_vm0, %v206_v27, %v182_v0 }
  0x42   :  { %v209_v34 = vsel %vm83_vm1, 0, %v207_v32 }
  0x43   :  { %vm185_vm14 = vcmp.lt.s32.totalorder %v184_v3, 0  ;;  %v186_v5 = vsub.s32 0, %v184_v3  ;;  %v380_v40 = vadd.s32 3, %v209_v34  ;;  %v226_v14 = vand.u32 3, %v209_v34 }
  0x45   :  { %v187_v6 = vsel %vm185_vm14, %v186_v5, %v184_v3  ;;  %v381_v47 = vand.u32 3, %v380_v40  ;;  %vm231_vm2 = vcmp.eq.s32.totalorder %v226_v14, 2  ;;  %vm227_vm4 = vcmp.lt.s32.totalorder %v226_v14, 2 }
  0x46   :  { %v188_v31 = vclz %v187_v6  ;;  %vm228_vm5 = vcmp.eq.s32.totalorder %v226_v14, 0 }
  0x47   :  { %vm386_vm3 = vcmp.eq.s32.totalorder %v381_v47, 2  ;;  %vm382_vm6 = vcmp.lt.s32.totalorder %v381_v47, 2  ;;  %vm383_vm7 = vcmp.eq.s32.totalorder %v381_v47, 0 }
  0x48   :  { %v448_v7 = vadd.s32 4294967294, %v188_v31 }
  0x4a   :  { %vm449_vm15 = vcmp.lt.s32.totalorder %v448_v7, 0 }
  0x4b   :  { %v191_v11 = vsel %vm449_vm15, 0, %v448_v7  ;;  %v404_v7 = vsel %vm403_vm11, %v468_v30, %v400_v61 }
  0x4c   :  { %v192_v12 = vsub.s32 32, %v191_v11  ;;  %v193_v13 = vshll.u32 %v184_v3, %v191_v11  ;;  %v196_v15 = vsub.s32 4294967266, %v191_v11 }
  0x4e   :  { %v194_v17 = vshrl.u32 %v176_v44, %v192_v12  ;;  %v197_v19 = vadd.s32 127, %v196_v15 }
  0x50   :  { %v195_v20 = vor.u32 %v194_v17, %v193_v13  ;;  %v198_v21 = vshll.u32 %v197_v19, 23 }
  0x52   :  { %v199_v23 = vor.u32 4788187, %v198_v21  ;;  %v202_v24 = vcvt.s32.f32 %v195_v20 }
  0x54   :  { %v200_v25 = vand.u32 2147483647, %v199_v23 }
  0x56   :  { %v203_v26 = vmul.f32 %v202_v24, %v200_v25 }
  0x58   :  { %v204_v28 = vxor.u32 2147483648, %v203_v26 }
  0x5a   :  { %v205_v29 = vsel %vm84_vm0, %v204_v28, %v203_v26 }
  0x5b   :  { %v208_v35 = vsel %vm83_vm1, %v585_v4, %v205_v29 }
  0x5c   :  { %v210_v33 = vmul.f32 %v208_v35, %v208_v35 }
  0x5e   :  { %v211_v36 = vmul.f32 -0.001358992, %v210_v33  ;;  %v218_v37 = vmul.f32 -0.00019511016, %v210_v33 }
  0x60   :  { %v212_v18 = vadd.f32 0.041655596, %v211_v36  ;;  %v219_v39 = vadd.f32 0.008332121, %v218_v37 }
  0x62   :  { %v213_v41 = vmul.f32 %v212_v18, %v210_v33  ;;  %v220_v42 = vmul.f32 %v219_v39, %v210_v33 }
  0x64   :  { %v214_v45 = vadd.f32 -0.4999988, %v213_v41  ;;  %v221_v46 = vadd.f32 -0.16666654, %v220_v42 }
  0x66   :  { %v215_v48 = vmul.f32 %v214_v45, %v210_v33  ;;  %v222_v49 = vmul.f32 %v221_v46, %v210_v33 }
  0x68   :  { %v216_v51 = vadd.f32 1.0, %v215_v48  ;;  %v223_v52 = vadd.f32 1.0, %v222_v49 }
  0x6a   :  { %v224_v53 = vmul.f32 %v223_v52, %v208_v35  ;;  %v232_v54 = vxor.u32 2147483648, %v216_v51 }
  0x6c   :  { %v229_v56 = vxor.u32 2147483648, %v224_v53  ;;  %v233_v57 = vsel %vm231_vm2, %v232_v54, %v224_v53  ;;  %v388_v58 = vsel %vm386_vm3, %v232_v54, %v224_v53 }
  0x6e   :  { %v230_v59 = vsel %vm228_vm5, %v216_v51, %v229_v56  ;;  %v385_v60 = vsel %vm383_vm7, %v216_v51, %v229_v56 }
  0x6f   :  { %v234_v62 = vsel %vm227_vm4, %v230_v59, %v233_v57  ;;  %v389_v63 = vsel %vm382_vm6, %v385_v60, %v388_v58 }
  0x70   :  { %v235_v0 = vsel %vm225_vm10, nan, %v234_v62  ;;  %v390_v2 = vsel %vm225_vm10, nan, %v389_v63 }
  0x71   :  { %v405_v3 = vmul.f32 %v235_v0, %v583_v1  ;;  %v406_v5 = vmul.f32 %v390_v2, %v591_v10  ;;  %v409_v6 = vmul.f32 %v235_v0, %v591_v10  ;;  %v410_v31 = vmul.f32 %v390_v2, %v583_v1 }
  0x73   :  { %v407_v8 = vsub.f32 %v405_v3, %v406_v5  ;;  %v411_v9 = vadd.f32 %v410_v31, %v409_v6 }
  0x75   :  { %v408_v4 = vmul.f32 %v407_v8, %v404_v7  ;;  %v412_v44 = vmul.f32 %v411_v9, %v404_v7 }
  0x77   :  { %v416_v11 = vsub.f32 %v408_v4, %v583_v1  ;;  %v420_v12 = vsub.f32 %v412_v44, %v591_v10 }
  0x79   :  { %v417_v13 = vmul.f32 20.0, %v416_v11  ;;  %v421_v15 = vmul.f32 20.0, %v420_v12 }
  0x7b   :  { %419 = vst [vmem:[#allocation7 + $0x10] sm:$0xff] %v417_v13 }
  0x7c   :  { %423 = vst [vmem:[#allocation7 + $0x18] sm:$0xff] %v421_v15 }
  0x7d   :  { %438 = dma.vmem_to_hbm [thread:$0]  %s431_s1, 640, %s433_s23, [#allocation4], %s548_s17, %s548_s17, %s549_s18  }
  0x7e   :  { %545 = dma.done.wait [#allocation4], 640  }
  0x7f   :  { %546 = vsyncadd [#allocation4], 4294966656 }
  0x80   :  { %443 = vsyncpa [#allocation3], 1 }
  0x81   :  { %444 = vsyncpa [#allocation6], 1 }
  0x82   :  { %445 = vsyncpa [#allocation4], 1 }

</bundles_post_ra>
